<compile_context>
chip_gen: v5e
topology: v5e:2x2
jax: 0.10.0
libtpu: 0.0.40
codegen_flags: <defaults>
</compile_context>

<pallas_src>
import jax
import jax.numpy as jnp
from jax.experimental import pallas as pl
from jax.experimental.pallas import tpu as pltpu

_EPS = 1e-05


def _frozen_bn_kernel(x_ref, sb_ref, o_ref):
    # x_ref / o_ref: (TR, TC) tile; sb_ref: (TR, 2) packed [scale, bias] (f32).
    sb = sb_ref[...]
    scale = sb[:, 0:1]
    bias = sb[:, 1:2]
    x = x_ref[...].astype(jnp.float32)   # no-op for f32, upcast for bf16
    o_ref[...] = (x * scale + bias).astype(o_ref.dtype)


def _round_up(x, m):
    return ((x + m - 1) // m) * m


def _round_down(x, m):
    return (x // m) * m


def _tile_budget_bytes():
    """Per-tile byte budget for the streaming x/out tiles (generation-aware)."""
    budget = 2 << 20  # conservative default: safe on every generation
    try:
        info = pltpu.get_tpu_info()
    except Exception:
        return budget
    vmem = int(getattr(info, "vmem_capacity_bytes", 0) or 0)
    if vmem <= 0:
        return budget
    # Keep double-buffered (x + out) tiles at <= vmem/4 for ample headroom;
    # clamp to 4 MiB tiles (v6e/v7x streaming sweet spot). Safe on v5e too
    # because vmem_limit_bytes is raised explicitly below.
    return int(max(1 << 20, min(4 << 20, vmem // 16)))


def _select_tiles(rows, hw, itemsize, sub, budget_bytes):
    """Pick (tr, tc): prefer full-H*W rows (contiguous linear DMA per tile)."""
    hw_pad = _round_up(hw, 128)
    rows_pad = _round_up(rows, sub)
    if sub * hw_pad * itemsize <= budget_bytes:
        # Full rows fit: tile only the row axis.
        tc = hw_pad
    else:
        # Have to split the column axis: lane-dense multiple-of-128 columns.
        tc = _round_down(budget_bytes // (sub * itemsize), 128)
        tc = max(128, min(tc, hw_pad))
    tr = _round_down(budget_bytes // (tc * itemsize), sub)
    tr = max(sub, min(tr, rows_pad))
    return tr, tc


def frozen_batch_norm_2d(x, weight, bias, running_mean, running_var,
                         *, tile_budget_bytes=None,
                         min_pallas_bytes=256 * 1024,
                         donate_x=False):
    """x: (N, C, H, W); params: (C,). Returns (N, C, H, W) in x.dtype."""
    N, C, H, W = x.shape
    rows = N * C
    hw = H * W
    itemsize = jnp.dtype(x.dtype).itemsize

    # Fold the frozen affine into one per-channel (scale, bias) pair in f32.
    scale_c = (weight.astype(jnp.float32)
               * jax.lax.rsqrt(running_var.astype(jnp.float32) + _EPS))  # (C,)
    bias_c = bias.astype(jnp.float32) - running_mean.astype(jnp.float32) * scale_c

    # Tiny-input fallback: fixed pallas_call overhead dominates, let XLA fuse.
    if rows * hw * itemsize < min_pallas_bytes:
        out = (x.astype(jnp.float32) * scale_c.reshape(1, C, 1, 1)
               + bias_c.reshape(1, C, 1, 1))
        return out.astype(x.dtype)

    # Pack [scale, bias] per row (n, c) -> (rows, 2) so one small DMA carries
    # both params for a row tile.
    sb_c = jnp.stack([scale_c, bias_c], axis=-1)                 # (C, 2)
    sb_r = jnp.broadcast_to(sb_c[None], (N, C, 2)).reshape(rows, 2)

    x2 = x.reshape(rows, hw)

    # Sublane alignment is dtype-dependent: f32 -> 8, bf16 -> 16, int8 -> 32.
    sub = max(8, 32 // itemsize)
    budget = tile_budget_bytes if tile_budget_bytes else _tile_budget_bytes()
    tr, tc = _select_tiles(rows, hw, itemsize, sub, budget)
    grid = (pl.cdiv(rows, tr), pl.cdiv(hw, tc))   # hw innermost: params re-DMA elided

    # Double-buffered x + out tiles, double-buffered params, plus headroom.
    vmem_limit = int(4 * tr * tc * itemsize + 4 * tr * 2 * 4 + (2 << 20))

    cost = pl.CostEstimate(
        flops=2 * rows * hw,
        transcendentals=0,
        bytes_accessed=2 * rows * hw * itemsize + rows * 2 * 4,
    )

    out = pl.pallas_call(
        _frozen_bn_kernel,
        out_shape=jax.ShapeDtypeStruct((rows, hw), x.dtype),
        grid=grid,
        in_specs=[
            pl.BlockSpec((tr, tc), lambda i, j: (i, j)),   # x tile
            pl.BlockSpec((tr, 2), lambda i, j: (i, 0)),    # packed [scale, bias]
        ],
        out_specs=pl.BlockSpec((tr, tc), lambda i, j: (i, j)),
        compiler_params=pltpu.CompilerParams(
            dimension_semantics=("parallel", "parallel"),
            vmem_limit_bytes=vmem_limit,
        ),
        cost_estimate=cost,
        input_output_aliases=({0: 0} if donate_x else {}),
    )(x2, sb_r)

    return out.reshape(N, C, H, W)


def frozen_batch_norm_2d_ref(x, weight, bias, running_mean, running_var):
    # Pure-JAX reference mirroring the PyTorch forward exactly.
    w = weight.reshape(1, -1, 1, 1)
    b = bias.reshape(1, -1, 1, 1)
    rv = running_var.reshape(1, -1, 1, 1)
    rm = running_mean.reshape(1, -1, 1, 1)
    scale = w * jax.lax.rsqrt(rv + _EPS)
    bias_ = b - rm * scale
    return x * scale + bias_


def _make_case(key, N, C, H, W, dtype=jnp.float32):
    k_x, k_w, k_b, k_m, k_v = jax.random.split(key, 5)
    x = jax.random.normal(k_x, (N, C, H, W), dtype=jnp.float32).astype(dtype)
    weight = jnp.ones((C,), jnp.float32) + 0.1 * jax.random.normal(k_w, (C,), jnp.float32)
    bias = 0.1 * jax.random.normal(k_b, (C,), jnp.float32)
    running_mean = 0.5 * jax.random.normal(k_m, (C,), jnp.float32)
    running_var = jnp.ones((C,), jnp.float32) + 0.2 * jnp.abs(
        jax.random.normal(k_v, (C,), jnp.float32))
    return x, weight, bias, running_mean, running_var


if __name__ == "__main__":
    key = jax.random.PRNGKey(0)

    # (shape, dtype, force_pallas)
    cases = [
        ((2, 4, 16, 16), jnp.float32, False),    # tiny -> XLA fallback path
        ((2, 4, 16, 16), jnp.float32, True),     # same shape, pallas path
        ((2, 8, 28, 28), jnp.float32, True),     # hw=784 -> masked lane tail
        ((2, 3, 16, 16), jnp.float32, True),     # rows=6 -> masked sublane tail
        ((4, 128, 32, 32), jnp.float32, True),   # multi-tile along row axis
        ((4, 32, 28, 28), jnp.bfloat16, True),   # bf16 I/O, f32 compute
    ]
    keys = jax.random.split(key, len(cases))
    for k, (shape, dtype, force) in zip(keys, cases):
        args = _make_case(k, *shape, dtype=dtype)
        out = jax.block_until_ready(
            frozen_batch_norm_2d(*args, min_pallas_bytes=0 if force else 256 * 1024))
        ref = frozen_batch_norm_2d_ref(*args).astype(dtype)
        assert out.shape == args[0].shape and out.dtype == dtype, (shape, dtype)
        tol = 1e-5 if dtype == jnp.float32 else 2e-2
        assert jnp.allclose(out.astype(jnp.float32), ref.astype(jnp.float32),
                            atol=tol, rtol=tol), (shape, dtype)

    print("KERNEL_OK")
</pallas_src>

<mosaic_0001>
module attributes {stable_mosaic.version = 11 : i64} {
  func.func @_frozen_bn_kernel(%arg0: i32, %arg1: i32, %arg2: memref<8x256xf32, #tpu.memory_space<vmem>>, %arg3: memref<8x2xf32, #tpu.memory_space<vmem>>, %arg4: memref<8x256xf32, #tpu.memory_space<vmem>>) attributes {dimension_semantics = [#tpu.dimension_semantics<parallel>, #tpu.dimension_semantics<parallel>], iteration_bounds = array<i64: 1, 1>, scalar_prefetch = 0 : i64, scratch_operands = 0 : i64, tpu.core_type = #tpu.core_type<tc>, window_params = [{transform_indices = @transform_0, window_bounds = array<i64: 8, 256>}, {transform_indices = @transform_1, window_bounds = array<i64: 8, 2>}, {transform_indices = @transform_2, window_bounds = array<i64: 8, 256>}]} {
    %c0 = arith.constant 0 : index
    %c0_0 = arith.constant 0 : index
    %0 = vector.load %arg3[%c0, %c0_0] : memref<8x2xf32, #tpu.memory_space<vmem>>, vector<8x2xf32>
    %1 = vector.extract_strided_slice %0 {offsets = [0, 0], sizes = [8, 1], strides = [1, 1]} : vector<8x2xf32> to vector<8x1xf32>
    %2 = vector.extract_strided_slice %0 {offsets = [0, 1], sizes = [8, 1], strides = [1, 1]} : vector<8x2xf32> to vector<8x1xf32>
    %c0_1 = arith.constant 0 : index
    %c0_2 = arith.constant 0 : index
    %3 = vector.load %arg2[%c0_1, %c0_2] : memref<8x256xf32, #tpu.memory_space<vmem>>, vector<8x256xf32>
    %4 = vector.broadcast %1 : vector<8x1xf32> to vector<8x256xf32>
    %5 = arith.mulf %3, %4 : vector<8x256xf32>
    %6 = vector.broadcast %2 : vector<8x1xf32> to vector<8x256xf32>
    %7 = arith.addf %5, %6 : vector<8x256xf32>
    %c0_3 = arith.constant 0 : index
    %c0_4 = arith.constant 0 : index
    %8 = vector.load %arg4[%c0_3, %c0_4] : memref<8x256xf32, #tpu.memory_space<vmem>>, vector<8x256xf32>
    tpu.vector_store %arg4[%c0_3, %c0_4], %7 {strides = array<i32>} : memref<8x256xf32, #tpu.memory_space<vmem>>, vector<8x256xf32>,
    return
  }
  func.func @transform_0(%arg0: i32, %arg1: i32) -> (i32, i32) {
    %c0_i32 = arith.constant 0 : i32
    return %arg0, %arg1 : i32, i32
  }
  func.func @transform_1(%arg0: i32, %arg1: i32) -> (i32, i32) {
    %c0_i32 = arith.constant 0 : i32
    %c0_i32_0 = arith.constant 0 : i32
    return %arg0, %c0_i32 : i32, i32
  }
  func.func @transform_2(%arg0: i32, %arg1: i32) -> (i32, i32) {
    %c0_i32 = arith.constant 0 : i32
    return %arg0, %arg1 : i32, i32
  }
}

</mosaic_0001>

<bundles_post_ra>
// kernel: tpu_custom_call.1
= control target key start
LH: loop header
LB: loop body
LE: loop exit
PB: predicated region body
PF: predicated region fallthrough
CT: control target
= control target key end

     0   :  { %7 = vsyncpa [#allocation3], 0  ;;  %s147_s0 = inlined_call_operand.hbm [shape: f32[8,256], index: 0, kind: input, shape index: {}]   ;;  %s148_s1 = inlined_call_operand.vmem [shape: f32[8,2], index: 1, kind: input, shape index: {}]   ;;  %s149_s2 = inlined_call_operand.hbm [shape: f32[8,256], index: 2, kind: output, shape index: {}]  }
   0x1   :  { %8 = vsyncpa [#allocation4], 0  ;;  %s14_s11 = sshll.u32 %s147_s0, 4  ;;  %s119_s12 = smov [#allocation2]   ;;  %s15_s11 = int_to_ptr.hbm [resolvable:$true] %s14_s11 }
   0x2   :  { %s16_s13 = sshll.u32 %s119_s12, 4  ;;  %s17_s13 = int_to_ptr.vmem [resolvable:$true] %s16_s13 }
   0x3   :  { %19 = dma.hbm_to_vmem [thread:$0]  %s15_s11, 256, %s17_s13, [#allocation3]  }
   0x4   :  { %115 = dma.done.wait [#allocation3], 256  }
   0x5   :  { %116 = vsyncadd [#allocation3], 4294967040  ;;  %v120_v0 = vmov 0   ;;  %v26_v1 = vld [vmem:[%s148_s1] sm:$0xff]  ;;  %v121_v2 = vmov 1   ;;  %v28_v5 = vld [vmem:[#allocation2 + $0x8] sm:$0xff] }
   0x6   :  { %65 = vset.pattern.permute.xlu0 %v120_v0  ;;  %v27_v4 = vld [vmem:[#allocation2] sm:$0xff]  ;;  %s122_s0 = smov [#allocation5]   ;;  %s51_s19 = sshll.u32 %s149_s2, 4  ;;  %s52_s19 = int_to_ptr.hbm [resolvable:$true] %s51_s19 }
   0x7   :  { %31 = vperm.xlu0 %65, %v26_v1   ;;  %s49_s16 = sshll.u32 %s122_s0, 4  ;;  %s50_s16 = int_to_ptr.vmem [resolvable:$true] %s49_s16 }
   0xf   :  { %66 = vset.pattern.permute.xlu0 %v121_v2 }
  0x10   :  { %37 = vperm.xlu0 %66, %v26_v1  }
  0x79   :  { %v32_v3 = vpop.permute.xlu0 %31 }
  0x7a   :  { %v34_v6 = vmul.f32 %v32_v3, %v27_v4  ;;  %v35_v7 = vmul.f32 %v32_v3, %v28_v5 }
  0x82   :  { %v38_v8 = vpop.permute.xlu0 %37 }
  0x83   :  { %v40_v9 = vadd.f32 %v38_v8, %v34_v6  ;;  %v41_v10 = vadd.f32 %v38_v8, %v35_v7 }
  0x85   :  { %42 = vst [vmem:[#allocation5] sm:$0xff] %v40_v9 }
  0x86   :  { %43 = vst [vmem:[#allocation5 + $0x8] sm:$0xff] %v41_v10 }
  0x87   :  { %54 = dma.vmem_to_hbm [thread:$0]  %s50_s16, 256, %s52_s19, [#allocation4]  }
  0x88   :  { %117 = dma.done.wait [#allocation4], 256  }
  0x89   :  { %118 = vsyncadd [#allocation4], 4294967040 }
  0x8a   :  { %59 = vsyncpa [#allocation3], 1 }
  0x8b   :  { %60 = vsyncpa [#allocation4], 1 }

</bundles_post_ra>
